<compile_context>
chip_gen: v7x
topology: tpu7x:2x2x1
jax: 0.10.0
libtpu: 0.0.40
codegen_flags: <defaults>
</compile_context>

<pallas_src>
import jax
import jax.numpy as jnp
import numpy as np
from jax.experimental import pallas as pl
from jax.experimental.pallas import tpu as pltpu

DIMS = [3, 32, 16, 8, 4, 2, 1]        # layer widths of SimpleBruteForceNN
NUM_LAYERS = len(DIMS) - 1            # 6 linear layers
IN_DIM = DIMS[0]                      # 3
OUT_DIM = DIMS[-1]                    # 1
FPAD = 32                             # stacked-weight padding (max layer width)
M_PAD = [32, 16, 8, 8, 8, 8]          # per-layer trimmed output rows
K_PAD = [IN_DIM, 32, 16, 8, 8, 8]     # per-layer trimmed contraction rows
MAX_TB = 32768                        # max batch tile on the lane dim
VMEM_LIMIT = 64 * 1024 * 1024         # scoped VMEM limit (<= v7x physical)


def _round_up(x, m):
    return ((x + m - 1) // m) * m


def mlp_kernel(x_ref, w_ref, b_ref, o_ref):
    """One batch tile: x (3, TB) bf16 -> o (1, TB) f32, fused 6-layer MLP.

    x_ref: (IN_DIM, TB) bf16        batch-on-lanes input tile
    w_ref: (6, 32, 32) bf16         stacked zero-padded weights, (out, in)
    b_ref: (6, 32, 1)  f32          stacked zero-padded biases
    o_ref: (1, TB)     f32          lane-dense sigmoid output tile
    """
    h = x_ref[...]                                        # (3, TB) bf16
    for layer in range(NUM_LAYERS):                       # tiny depth: unroll
        m, k = M_PAD[layer], K_PAD[layer]
        w = w_ref[layer][:m, :k]                          # static slice, bf16
        b = b_ref[layer][:m]                              # (m, 1) f32
        # bf16 x bf16 MXU matmul, exact f32 accumulation.
        z = jnp.dot(w, h, preferred_element_type=jnp.float32) + b
        if layer < NUM_LAYERS - 1:
            h = jnp.maximum(z, 0.0).astype(jnp.bfloat16)  # ReLU, back to bf16
        else:
            o_ref[...] = jax.nn.sigmoid(z[:OUT_DIM, :])   # only row 0 is real


def init_params(key):
    """nn.Linear-style init: U[-1/sqrt(fan_in), +1/sqrt(fan_in)], W is (out, in)."""
    ws, bs = [], []
    for i in range(NUM_LAYERS):
        fan_in, fan_out = DIMS[i], DIMS[i + 1]
        key, kw, kb = jax.random.split(key, 3)
        bound = 1.0 / np.sqrt(fan_in)
        ws.append(jax.random.uniform(kw, (fan_out, fan_in), jnp.float32, -bound, bound))
        bs.append(jax.random.uniform(kb, (fan_out,), jnp.float32, -bound, bound))
    return ws, bs


def pack_params(ws, bs):
    """Zero-pad (out, in) weights / biases into (6,32,32) bf16 / (6,32,1) f32."""
    w_stack = np.zeros((NUM_LAYERS, FPAD, FPAD), np.float32)
    b_stack = np.zeros((NUM_LAYERS, FPAD, 1), np.float32)
    for i, (w, b) in enumerate(zip(ws, bs)):
        fan_out, fan_in = w.shape
        w_stack[i, :fan_out, :fan_in] = np.asarray(w)
        b_stack[i, :fan_out, 0] = np.asarray(b)
    return (jnp.asarray(w_stack).astype(jnp.bfloat16),
            jnp.asarray(b_stack, jnp.float32))


@jax.jit
def simple_brute_force_nn_t(x_t, w_stack, b_stack):
    """Batch-on-lanes forward: x_t (3, B) -> (1, B) f32 (sigmoid outputs)."""
    B = x_t.shape[1]
    # Batch tile: as large as possible, but prefer >= 2 grid steps so the
    # "parallel" batch axis can be split across both v7x TensorCores.
    tb = max(128, min(MAX_TB, _round_up(-(-B // 2), 128)))
    bp = _round_up(B, tb)
    xb = x_t.astype(jnp.bfloat16)
    if bp != B:
        xb = jnp.pad(xb, ((0, 0), (0, bp - B)))           # lane-rounding only

    out_t = pl.pallas_call(
        mlp_kernel,
        out_shape=jax.ShapeDtypeStruct((OUT_DIM, bp), jnp.float32),
        grid=(bp // tb,),
        in_specs=[
            pl.BlockSpec((IN_DIM, tb), lambda i: (0, i)),
            pl.BlockSpec((NUM_LAYERS, FPAD, FPAD), lambda i: (0, 0, 0)),
            pl.BlockSpec((NUM_LAYERS, FPAD, 1), lambda i: (0, 0, 0)),
        ],
        out_specs=pl.BlockSpec((OUT_DIM, tb), lambda i: (0, i)),
        compiler_params=pltpu.CompilerParams(
            dimension_semantics=("parallel",),
            vmem_limit_bytes=VMEM_LIMIT),
    )(xb, w_stack, b_stack)
    return out_t[:, :B]


@jax.jit
def simple_brute_force_nn(x, w_stack, b_stack):
    """PyTorch-API wrapper: x (B, 3) f32 -> (B, 1) f32."""
    return simple_brute_force_nn_t(x.T, w_stack, b_stack).T


def reference_forward(x, ws, bs):
    """Pure-JAX f32 reference (same math as the PyTorch module)."""
    h = x
    for i in range(NUM_LAYERS - 1):
        h = jnp.maximum(h @ ws[i].T + bs[i], 0.0)
    return jax.nn.sigmoid(h @ ws[-1].T + bs[-1])


if __name__ == "__main__":
    key = jax.random.PRNGKey(0)
    key, kx = jax.random.split(key)

    B = 200  # two batch tiles (tb=128) + lane padding of the last tile
    x = jax.random.normal(kx, (B, IN_DIM), jnp.float32)

    ws, bs = init_params(key)
    w_stack, b_stack = pack_params(ws, bs)

    out = simple_brute_force_nn(x, w_stack, b_stack)
    out = jax.block_until_ready(out)

    ref = reference_forward(x, ws, bs)
    assert out.shape == (B, OUT_DIM), out.shape
    # bf16 MXU matmuls (with f32 accumulation) by design -> relaxed tolerance
    # vs. the pure-f32 reference.
    np.testing.assert_allclose(np.asarray(out), np.asarray(ref),
                               rtol=2e-2, atol=2e-2)
    print("KERNEL_OK")
</pallas_src>

<mosaic_0001>
module attributes {stable_mosaic.version = 11 : i64} {
  func.func @mlp_kernel(%arg0: i32, %arg1: memref<3x128xbf16, #tpu.memory_space<vmem>>, %arg2: memref<6x32x32xbf16, #tpu.memory_space<vmem>>, %arg3: memref<6x32x1xf32, #tpu.memory_space<vmem>>, %arg4: memref<1x128xf32, #tpu.memory_space<vmem>>) attributes {dimension_semantics = [#tpu.dimension_semantics<parallel>], iteration_bounds = array<i64: 2>, scalar_prefetch = 0 : i64, scratch_operands = 0 : i64, tpu.core_type = #tpu.core_type<tc>, window_params = [{transform_indices = @transform_0, window_bounds = array<i64: 3, 128>}, {pipeline_mode = #tpu.pipeline_mode<synchronous>, transform_indices = @transform_1, window_bounds = array<i64: 6, 32, 32>}, {pipeline_mode = #tpu.pipeline_mode<synchronous>, transform_indices = @transform_2, window_bounds = array<i64: 6, 32, 1>}, {transform_indices = @transform_3, window_bounds = array<i64: 1, 128>}]} {
    %c0 = arith.constant 0 : index
    %c0_0 = arith.constant 0 : index
    %0 = vector.load %arg1[%c0, %c0_0] : memref<3x128xbf16, #tpu.memory_space<vmem>>, vector<3x128xbf16>
    %c0_1 = arith.constant 0 : index
    %c0_2 = arith.constant 0 : index
    %c0_3 = arith.constant 0 : index
    %1 = vector.load %arg2[%c0_1, %c0_2, %c0_3] : memref<6x32x32xbf16, #tpu.memory_space<vmem>>, vector<1x32x32xbf16>
    %2 = vector.shape_cast %1 : vector<1x32x32xbf16> to vector<32x32xbf16>
    %3 = vector.extract_strided_slice %2 {offsets = [0, 0], sizes = [32, 3], strides = [1, 1]} : vector<32x32xbf16> to vector<32x3xbf16>
    %c0_4 = arith.constant 0 : index
    %c0_5 = arith.constant 0 : index
    %c0_6 = arith.constant 0 : index
    %4 = vector.load %arg3[%c0_4, %c0_5, %c0_6] : memref<6x32x1xf32, #tpu.memory_space<vmem>>, vector<1x32x1xf32>
    %5 = vector.shape_cast %4 : vector<1x32x1xf32> to vector<32x1xf32>
    %cst = arith.constant dense<0.000000e+00> : vector<32x128xf32>
    %6 = tpu.matmul %3, %0, %cst {dimension_numbers = #tpu.dot_dimension_numbers<[1], [0], [0], [1], [0, 0, 1, 1], [], []>} : vector<32x3xbf16>, vector<3x128xbf16>, vector<32x128xf32> -> vector<32x128xf32>
    %7 = vector.broadcast %5 : vector<32x1xf32> to vector<32x128xf32>
    %8 = arith.addf %6, %7 : vector<32x128xf32>
    %cst_7 = arith.constant 0.000000e+00 : f32
    %9 = vector.broadcast %cst_7 : f32 to vector<32x128xf32>
    %10 = arith.maximumf %8, %9 : vector<32x128xf32>
    %11 = arith.truncf %10 : vector<32x128xf32> to vector<32x128xbf16>
    %c1 = arith.constant 1 : index
    %c0_8 = arith.constant 0 : index
    %c0_9 = arith.constant 0 : index
    %12 = vector.load %arg2[%c1, %c0_8, %c0_9] : memref<6x32x32xbf16, #tpu.memory_space<vmem>>, vector<1x32x32xbf16>
    %13 = vector.shape_cast %12 : vector<1x32x32xbf16> to vector<32x32xbf16>
    %14 = vector.extract_strided_slice %13 {offsets = [0, 0], sizes = [16, 32], strides = [1, 1]} : vector<32x32xbf16> to vector<16x32xbf16>
    %c1_10 = arith.constant 1 : index
    %c0_11 = arith.constant 0 : index
    %c0_12 = arith.constant 0 : index
    %15 = vector.load %arg3[%c1_10, %c0_11, %c0_12] : memref<6x32x1xf32, #tpu.memory_space<vmem>>, vector<1x32x1xf32>
    %16 = vector.shape_cast %15 : vector<1x32x1xf32> to vector<32x1xf32>
    %17 = vector.extract_strided_slice %16 {offsets = [0, 0], sizes = [16, 1], strides = [1, 1]} : vector<32x1xf32> to vector<16x1xf32>
    %cst_13 = arith.constant dense<0.000000e+00> : vector<16x128xf32>
    %18 = tpu.matmul %14, %11, %cst_13 {dimension_numbers = #tpu.dot_dimension_numbers<[1], [0], [0], [1], [0, 0, 1, 1], [], []>} : vector<16x32xbf16>, vector<32x128xbf16>, vector<16x128xf32> -> vector<16x128xf32>
    %19 = vector.broadcast %17 : vector<16x1xf32> to vector<16x128xf32>
    %20 = arith.addf %18, %19 : vector<16x128xf32>
    %cst_14 = arith.constant 0.000000e+00 : f32
    %21 = vector.broadcast %cst_14 : f32 to vector<16x128xf32>
    %22 = arith.maximumf %20, %21 : vector<16x128xf32>
    %23 = arith.truncf %22 : vector<16x128xf32> to vector<16x128xbf16>
    %c2 = arith.constant 2 : index
    %c0_15 = arith.constant 0 : index
    %c0_16 = arith.constant 0 : index
    %24 = vector.load %arg2[%c2, %c0_15, %c0_16] : memref<6x32x32xbf16, #tpu.memory_space<vmem>>, vector<1x32x32xbf16>
    %25 = vector.shape_cast %24 : vector<1x32x32xbf16> to vector<32x32xbf16>
    %26 = vector.extract_strided_slice %25 {offsets = [0, 0], sizes = [8, 16], strides = [1, 1]} : vector<32x32xbf16> to vector<8x16xbf16>
    %c2_17 = arith.constant 2 : index
    %c0_18 = arith.constant 0 : index
    %c0_19 = arith.constant 0 : index
    %27 = vector.load %arg3[%c2_17, %c0_18, %c0_19] : memref<6x32x1xf32, #tpu.memory_space<vmem>>, vector<1x32x1xf32>
    %28 = vector.shape_cast %27 : vector<1x32x1xf32> to vector<32x1xf32>
    %29 = vector.extract_strided_slice %28 {offsets = [0, 0], sizes = [8, 1], strides = [1, 1]} : vector<32x1xf32> to vector<8x1xf32>
    %cst_20 = arith.constant dense<0.000000e+00> : vector<8x128xf32>
    %30 = tpu.matmul %26, %23, %cst_20 {dimension_numbers = #tpu.dot_dimension_numbers<[1], [0], [0], [1], [0, 0, 1, 1], [], []>} : vector<8x16xbf16>, vector<16x128xbf16>, vector<8x128xf32> -> vector<8x128xf32>
    %31 = vector.broadcast %29 : vector<8x1xf32> to vector<8x128xf32>
    %32 = arith.addf %30, %31 : vector<8x128xf32>
    %cst_21 = arith.constant 0.000000e+00 : f32
    %33 = vector.broadcast %cst_21 : f32 to vector<8x128xf32>
    %34 = arith.maximumf %32, %33 : vector<8x128xf32>
    %35 = arith.truncf %34 : vector<8x128xf32> to vector<8x128xbf16>
    %c3 = arith.constant 3 : index
    %c0_22 = arith.constant 0 : index
    %c0_23 = arith.constant 0 : index
    %36 = vector.load %arg2[%c3, %c0_22, %c0_23] : memref<6x32x32xbf16, #tpu.memory_space<vmem>>, vector<1x32x32xbf16>
    %37 = vector.shape_cast %36 : vector<1x32x32xbf16> to vector<32x32xbf16>
    %38 = vector.extract_strided_slice %37 {offsets = [0, 0], sizes = [8, 8], strides = [1, 1]} : vector<32x32xbf16> to vector<8x8xbf16>
    %c3_24 = arith.constant 3 : index
    %c0_25 = arith.constant 0 : index
    %c0_26 = arith.constant 0 : index
    %39 = vector.load %arg3[%c3_24, %c0_25, %c0_26] : memref<6x32x1xf32, #tpu.memory_space<vmem>>, vector<1x32x1xf32>
    %40 = vector.shape_cast %39 : vector<1x32x1xf32> to vector<32x1xf32>
    %41 = vector.extract_strided_slice %40 {offsets = [0, 0], sizes = [8, 1], strides = [1, 1]} : vector<32x1xf32> to vector<8x1xf32>
    %cst_27 = arith.constant dense<0.000000e+00> : vector<8x128xf32>
    %42 = tpu.matmul %38, %35, %cst_27 {dimension_numbers = #tpu.dot_dimension_numbers<[1], [0], [0], [1], [0, 0, 1, 1], [], []>} : vector<8x8xbf16>, vector<8x128xbf16>, vector<8x128xf32> -> vector<8x128xf32>
    %43 = vector.broadcast %41 : vector<8x1xf32> to vector<8x128xf32>
    %44 = arith.addf %42, %43 : vector<8x128xf32>
    %cst_28 = arith.constant 0.000000e+00 : f32
    %45 = vector.broadcast %cst_28 : f32 to vector<8x128xf32>
    %46 = arith.maximumf %44, %45 : vector<8x128xf32>
    %47 = arith.truncf %46 : vector<8x128xf32> to vector<8x128xbf16>
    %c4 = arith.constant 4 : index
    %c0_29 = arith.constant 0 : index
    %c0_30 = arith.constant 0 : index
    %48 = vector.load %arg2[%c4, %c0_29, %c0_30] : memref<6x32x32xbf16, #tpu.memory_space<vmem>>, vector<1x32x32xbf16>
    %49 = vector.shape_cast %48 : vector<1x32x32xbf16> to vector<32x32xbf16>
    %50 = vector.extract_strided_slice %49 {offsets = [0, 0], sizes = [8, 8], strides = [1, 1]} : vector<32x32xbf16> to vector<8x8xbf16>
    %c4_31 = arith.constant 4 : index
    %c0_32 = arith.constant 0 : index
    %c0_33 = arith.constant 0 : index
    %51 = vector.load %arg3[%c4_31, %c0_32, %c0_33] : memref<6x32x1xf32, #tpu.memory_space<vmem>>, vector<1x32x1xf32>
    %52 = vector.shape_cast %51 : vector<1x32x1xf32> to vector<32x1xf32>
    %53 = vector.extract_strided_slice %52 {offsets = [0, 0], sizes = [8, 1], strides = [1, 1]} : vector<32x1xf32> to vector<8x1xf32>
    %cst_34 = arith.constant dense<0.000000e+00> : vector<8x128xf32>
    %54 = tpu.matmul %50, %47, %cst_34 {dimension_numbers = #tpu.dot_dimension_numbers<[1], [0], [0], [1], [0, 0, 1, 1], [], []>} : vector<8x8xbf16>, vector<8x128xbf16>, vector<8x128xf32> -> vector<8x128xf32>
    %55 = vector.broadcast %53 : vector<8x1xf32> to vector<8x128xf32>
    %56 = arith.addf %54, %55 : vector<8x128xf32>
    %cst_35 = arith.constant 0.000000e+00 : f32
    %57 = vector.broadcast %cst_35 : f32 to vector<8x128xf32>
    %58 = arith.maximumf %56, %57 : vector<8x128xf32>
    %59 = arith.truncf %58 : vector<8x128xf32> to vector<8x128xbf16>
    %c5 = arith.constant 5 : index
    %c0_36 = arith.constant 0 : index
    %c0_37 = arith.constant 0 : index
    %60 = vector.load %arg2[%c5, %c0_36, %c0_37] : memref<6x32x32xbf16, #tpu.memory_space<vmem>>, vector<1x32x32xbf16>
    %61 = vector.shape_cast %60 : vector<1x32x32xbf16> to vector<32x32xbf16>
    %62 = vector.extract_strided_slice %61 {offsets = [0, 0], sizes = [8, 8], strides = [1, 1]} : vector<32x32xbf16> to vector<8x8xbf16>
    %c5_38 = arith.constant 5 : index
    %c0_39 = arith.constant 0 : index
    %c0_40 = arith.constant 0 : index
    %63 = vector.load %arg3[%c5_38, %c0_39, %c0_40] : memref<6x32x1xf32, #tpu.memory_space<vmem>>, vector<1x32x1xf32>
    %64 = vector.shape_cast %63 : vector<1x32x1xf32> to vector<32x1xf32>
    %65 = vector.extract_strided_slice %64 {offsets = [0, 0], sizes = [8, 1], strides = [1, 1]} : vector<32x1xf32> to vector<8x1xf32>
    %cst_41 = arith.constant dense<0.000000e+00> : vector<8x128xf32>
    %66 = tpu.matmul %62, %59, %cst_41 {dimension_numbers = #tpu.dot_dimension_numbers<[1], [0], [0], [1], [0, 0, 1, 1], [], []>} : vector<8x8xbf16>, vector<8x128xbf16>, vector<8x128xf32> -> vector<8x128xf32>
    %67 = vector.broadcast %65 : vector<8x1xf32> to vector<8x128xf32>
    %68 = arith.addf %66, %67 : vector<8x128xf32>
    %69 = vector.extract_strided_slice %68 {offsets = [0, 0], sizes = [1, 128], strides = [1, 1]} : vector<8x128xf32> to vector<1x128xf32>
    %70 = arith.negf %69 : vector<1x128xf32>
    %71 = math.exp %70 : vector<1x128xf32>
    %cst_42 = arith.constant 1.000000e+00 : f32
    %72 = vector.broadcast %cst_42 : f32 to vector<1x128xf32>
    %73 = arith.addf %72, %71 : vector<1x128xf32>
    %74 = arith.divf %72, %73 : vector<1x128xf32>
    %c0_43 = arith.constant 0 : index
    %c0_44 = arith.constant 0 : index
    %75 = vector.load %arg4[%c0_43, %c0_44] : memref<1x128xf32, #tpu.memory_space<vmem>>, vector<1x128xf32>
    tpu.vector_store %arg4[%c0_43, %c0_44], %74 {strides = array<i32>} : memref<1x128xf32, #tpu.memory_space<vmem>>, vector<1x128xf32>,
    return
  }
  func.func @transform_0(%arg0: i32) -> (i32, i32) {
    %c0_i32 = arith.constant 0 : i32
    %c0_i32_0 = arith.constant 0 : i32
    return %c0_i32, %arg0 : i32, i32
  }
  func.func @transform_1(%arg0: i32) -> (i32, i32, i32) {
    %c0_i32 = arith.constant 0 : i32
    %c0_i32_0 = arith.constant 0 : i32
    %c0_i32_1 = arith.constant 0 : i32
    %c0_i32_2 = arith.constant 0 : i32
    return %c0_i32, %c0_i32_0, %c0_i32_1 : i32, i32, i32
  }
  func.func @transform_2(%arg0: i32) -> (i32, i32, i32) {
    %c0_i32 = arith.constant 0 : i32
    %c0_i32_0 = arith.constant 0 : i32
    %c0_i32_1 = arith.constant 0 : i32
    %c0_i32_2 = arith.constant 0 : i32
    return %c0_i32, %c0_i32_0, %c0_i32_1 : i32, i32, i32
  }
  func.func @transform_3(%arg0: i32) -> (i32, i32) {
    %c0_i32 = arith.constant 0 : i32
    %c0_i32_0 = arith.constant 0 : i32
    return %c0_i32, %arg0 : i32, i32
  }
}

</mosaic_0001>

<bundles_post_ra>
// kernel: simple_brute_force_nn_t.1
= control target key start
LH: loop header
LB: loop body
LE: loop exit
PB: predicated region body
PF: predicated region fallthrough
CT: control target
= control target key end

     0   :  { %8 = vsyncpa [#allocation3], 0  ;;  %s1326_s0 = inlined_call_operand.hbm [shape: bf16[3,256], index: 0, kind: input, shape index: {}]   ;;  %s1327_s1 = inlined_call_operand.hbm [shape: bf16[6,32,32], index: 1, kind: input, shape index: {}]   ;;  %s1328_s2 = inlined_call_operand.hbm [shape: f32[6,32,1], index: 2, kind: input, shape index: {}]   ;;  %s1329_s3 = inlined_call_operand.hbm [shape: f32[1,256], index: 3, kind: output, shape index: {}]  }
   0x1   :  { %10 = vsyncpa [#allocation3 + $0x1], 0 }
   0x2   :  { %11 = vsyncpa [#allocation6], 0 }
   0x3   :  { %12 = vsyncpa [#allocation4], 0 }
   0x4   :  { %14 = vsyncpa [#allocation4 + $0x1], 0  ;;  %s1074_s12 = smov 0   ;;  %s1076_s13 = smov 0  }
   0x5   :  { %s1078_s14 = smov 0   ;;  %s1080_s15 = smov 0  }
   0x6 LB: > { %s1095_s16 = sadd.s32 4294967295, %s1040_s15   ;;  %s723_s17 = sadd.s32 4294967294, %s1040_s15   ;;  %s1040_s15 = sphi %s1080_s15, %s1349_s15   ;;  %s1036_s14 = sphi %s1078_s14, %s1348_s14   ;;  %s1032_s13 = sphi %s1076_s13, %s1347_s13   ;;  %s1028_s12 = sphi %s1074_s12, %s1346_s12  }
   0x7   : > { %p40_p0 = scmp.ne.s32.totalorder %s1032_s13, %s1028_s12  ;;  %p1330_p1 = scmp.eq.s32.totalorder %s1095_s16, 0 }
   0x8   : > { %p112_p3 = scmp.eq.s32.totalorder %s723_s17, 1  ;;  %p724_p5 = scmp.ge.s32.totalorder %s1040_s15, 1 }
   0x9   : > { %p1104_p4 = por %p1330_p1, %p40_p0  ;;  %p119_p7 = scmp.lt.s32.totalorder %s1040_s15, 3 }
   0xa   : > { %p1109_p6 = por %p112_p3, %p40_p0  ;;  %s1042_s21 = smov [#allocation5]  }
   0xb   : > { %s1333_s18 = scalar_select %p1104_p4, 1, 0 }
   0xc   : > { %s1334_s19 = scalar_select %p1109_p6, 1, 0 }
   0xd   : > { %p1114_p8 = pnand %p724_p5, %p119_p7  ;;  %s131_s22 = sshll.u32 %s1042_s21, 4  ;;  %s1118_s22 = int_to_ptr.vmem [resolvable:$true] %s131_s22 }
   0xe   : > { %s1043_s24 = smov [#allocation7]   ;;  %s884_s28 = scalar_lea.hbm %s1327_s1, 1536 }
   0xf   : > { %p812_p9 = pneg %p1114_p8  ;;  %s144_s25 = sshll.u32 %s1043_s24, 4  ;;  %s1129_s25 = int_to_ptr.vmem [resolvable:$true] %s144_s25 }
  0x10   : > { %p885_p12 = scmp.ne.s32.totalorder %s1327_s1, %s884_s28  ;;  %p891_p5 = scmp.lt.u32.totalorder %s884_s28, %s1327_s1 }
  0x11   : > { %p1125_p11 = pnand %p812_p9, %p1330_p1 }
  0x13   : > { %p886_p13 = pneg %p1125_p11 }
  0x15   : > { %p887_p0 = pnand %p886_p13, %p885_p12 }
  0x17   : > { %p888_p3 = pneg %p887_p0 }
  0x19   : > { %p893_p7 = pnand %p891_p5, %p888_p3 }
  0x1b   : > { %896 = shalt.err (!%p893_p7)
}
  0x1c   : > { %s897_s6 = scalar_lea.vmem %s1118_s22, 1536  ;;  %p905_p2 = scmp.lt.s32.totalorder %s1118_s22, %s1118_s22 }
  0x1d   : > { %p898_p9 = scmp.ne.s32.totalorder %s1118_s22, %s897_s6  ;;  %p906_p12 = scmp.lt.s32.totalorder %s897_s6, %s897_s6 }
  0x1f   : > { %p900_p10 = pnand %p898_p9, %p886_p13  ;;  %p907_p0 = por %p906_p12, %p905_p2 }
  0x21   : > { %p901_p1 = pneg %p900_p10 }
  0x23   : > { %p908_p6 = pnand %p907_p0, %p901_p1 }
  0x25   : > { %911 = shalt.err (!%p908_p6)
}
  0x26   : > { %s1044_s7 = smov 64   ;;  %s1045_s8 = smov 4  }
  0x27   : > { %815 = dma.hbm_to_vmem [thread:$0]  (!%p1125_p11), %s1327_s1, 1536, %s1118_s22, [#allocation6], %s1044_s7, %s1044_s7, %s1045_s8  }
  0x28   : > { %s912_s21 = scalar_lea.hbm %s1328_s2, 3072 }
  0x29   : > { %p913_p2 = scmp.ne.s32.totalorder %s1328_s2, %s912_s21  ;;  %p919_p10 = scmp.lt.u32.totalorder %s912_s21, %s1328_s2 }
  0x2b   : > { %p915_p1 = pnand %p913_p2, %p886_p13 }
  0x2d   : > { %p916_p6 = pneg %p915_p1 }
  0x2f   : > { %p921_p3 = pnand %p919_p10, %p916_p6 }
  0x31   : > { %924 = shalt.err (!%p921_p3)
}
  0x32   : > { %s925_s22 = scalar_lea.vmem %s1129_s25, 3072  ;;  %p933_p12 = scmp.lt.s32.totalorder %s1129_s25, %s1129_s25 }
  0x33   : > { %p926_p5 = scmp.ne.s32.totalorder %s1129_s25, %s925_s22  ;;  %p934_p0 = scmp.lt.s32.totalorder %s925_s22, %s925_s22 }
  0x35   : > { %p928_p7 = pnand %p926_p5, %p886_p13  ;;  %p935_p2 = por %p934_p0, %p933_p12 }
  0x37   : > { %p929_p9 = pneg %p928_p7 }
  0x39   : > { %p936_p1 = pnand %p935_p2, %p929_p9 }
  0x3b   : > { %939 = shalt.err (!%p936_p1)
}
  0x3c   : > { %s1046_s29 = smov 128   ;;  %s1047_s30 = smov 8  }
  0x3d   : > { %818 = dma.hbm_to_vmem [thread:$0]  (!%p1125_p11), %s1328_s2, 3072, %s1129_s25, [#allocation6], %s1046_s29, %s1046_s29, %s1047_s30  }
  0x3e   : > { %s1184_s6 = sadd.s32 1, %s1040_s15   ;;  %s27_s8 = sadd.s32 1, %s1036_s14 }
  0x3f   : > { %s24_s7 = ssub.s32 %s1040_s15, %s1184_s6  ;;  %p34_p6 = scmp.ne.s32.totalorder %s1036_s14, %s1032_s13 }
  0x40   : > { %p25_p13 = scmp.eq.s32.totalorder %s24_s7, 0  ;;  %p35_p10 = scmp.eq.s32.totalorder %s1040_s15, 0 }
  0x41   : > { %p1337_p5 = scmp.eq.s32.totalorder %s1095_s16, 1  ;;  %p829_p9 = scmp.lt.s32.totalorder %s1040_s15, 2 }
  0x42   : > { %s1193_s9 = scalar_select %p25_p13, %s1036_s14, %s27_s8  }
  0x43   : > { %p36_p3 = por %p35_p10, %p34_p6  ;;  %p1197_p7 = por %p1337_p5, %p34_p6 }
  0x44   : > { %s158_s23 = sand.u32 1, %s1036_s14   ;;  %s729_s25 = sshll.u32 %s1040_s15, 5 }
  0x45   : > { %s1338_s10 = scalar_select %p1197_p7, 1, 0 }
  0x46   : > { %s728_s11 = sshll.u32 %s158_s23, 1  ;;  %s1207_s24 = scalar_lea.hbm %s1326_s0, %s729_s25 }
  0x47   : > { %s162_s26 = scalar_lea.vmem [#allocation2], %s728_s11  ;;  %p1211_p11 = pnand %p829_p9, %p36_p3 }
  0x48   : > { %s169_s27 = sshll.u32 %s162_s26, 4  ;;  %s159_s22 = scalar_lea.sflag [#allocation3], %s158_s23  ;;  %s1209_s27 = int_to_ptr.vmem [resolvable:$true] %s169_s27 }
  0x49   : > { %s940_s29 = scalar_lea.hbm %s1207_s24, 32  ;;  %p942_p0 = pneg %p1211_p11 }
  0x4a   : > { %p941_p12 = scmp.ne.s32.totalorder %s1207_s24, %s940_s29  ;;  %s945_s5 = scalar_lea.hbm %s1326_s0, 64 }
  0x4b   : > { %p946_p13 = scmp.lt.u32.totalorder %s1207_s24, %s1326_s0  ;;  %p947_p6 = scmp.lt.u32.totalorder %s945_s5, %s940_s29 }
  0x4c   : > { %p943_p2 = pnand %p942_p0, %p941_p12  ;;  %p949_p3 = scmp.lt.u32.totalorder %s940_s29, %s1207_s24 }
  0x4d   : > { %p948_p10 = por %p947_p6, %p946_p13 }
  0x4e   : > { %p944_p1 = pneg %p943_p2 }
  0x4f   : > { %p950_p5 = por %p949_p3, %p948_p10 }
  0x51   : > { %p951_p9 = pnand %p950_p5, %p944_p1 }
  0x53   : > { %954 = shalt.err (!%p951_p9)
}
  0x54   : > { %s955_s23 = scalar_lea.vmem %s1209_s27, 32  ;;  %s1048_s11 = smov [#allocation2]  }
  0x55   : > { %p956_p12 = scmp.ne.s32.totalorder %s1209_s27, %s955_s23  ;;  %s960_s25 = sshll.u32 %s1048_s11, 4  ;;  %s961_s25 = int_to_ptr.vmem [resolvable:$false] %s960_s25 }
  0x56   : > { %s962_s17 = scalar_lea.vmem %s961_s25, 64  ;;  %p963_p4 = scmp.lt.s32.totalorder %s1209_s27, %s961_s25 }
  0x57   : > { %p958_p2 = pnand %p956_p12, %p942_p0  ;;  %p964_p13 = scmp.lt.s32.totalorder %s962_s17, %s955_s23 }
  0x59   : > { %p959_p7 = pneg %p958_p2  ;;  %p965_p6 = por %p964_p13, %p963_p4 }
  0x5b   : > { %p966_p10 = pnand %p965_p6, %p959_p7 }
  0x5d   : > { %969 = shalt.err (!%p966_p10)
}
  0x5e   : > { %822 = dma.hbm_to_vmem [thread:$0]  (!%p1211_p11), %s1207_s24, 32, %s1209_s27, %s159_s22  }
  0x5f   : > { %178 = sbr.rel (%p1114_p8) target bundleno = 1486 (0x5ce), region = 32  ;;  %s1243_s21 = sand.u32 (!%p1114_p8), 1, %s1032_s13  }
  0x60   : > { %s731_s26 = sshll.u32 (!%p1114_p8), %s1243_s21, 1  ;;  %s181_s29 = scalar_lea.sflag (!%p1114_p8), [#allocation3], %s1243_s21 }
  0x61   : > { %s184_s30 = scalar_lea.vmem (!%p1114_p8), [#allocation2], %s731_s26  ;;  %p1340_p4 = scmp.ne.s32.totalorder (!%p1114_p8), %s1333_s18, 0 }
  0x66   : > { %1015 = dma.done.wait (%p1340_p4), %s181_s29, 32  }
  0x67   : > { %1017 = vsyncadd (%p1340_p4), %s181_s29, 4294967264  ;;  %p1341_p7 = scmp.eq.s32.totalorder %s1095_s16, 0 }
  0x69   : > { %1019 = dma.done.wait (%p1341_p7), [#allocation6], 4608   ;;  %p1342_p11 = pmov %p1341_p7 }
  0x6a   : > { %vm261_vm0 = vcmask 1040384   ;;  %vm262_vm1 = vcmask 1041408   ;;  %v1049_v0 = vmov 65535   ;;  %v1050_v2 = vmov 0   ;;  %v215_v4 = vld [vmem:[%s184_s30] sm:$0x3] }
  0x6b   : > { %1021 = vsyncadd (%p1342_p11), [#allocation6], 4294962688  ;;  %v263_v1 = vsel %vm261_vm0, 4294967295, %v1049_v0  ;;  %875 = vset.pattern.permute.xlu0 %v1050_v2  ;;  %876 = vset.pattern.permute.xlu1 %v1050_v2  ;;  %vm254_vm2 = vcmask 23552   ;;  %v877_v6 = vld [vmem:[#allocation5] sm:$0xff]   ;;  %v222_v8 = vld [vmem:[#allocation7 + $0x10] sm:$0xff] }
  0x6c   : > { %v264_v3 = vsel %vm262_vm1, %v263_v1, 0  ;;  %v220_v7 = vld [vmem:[#allocation7] sm:$0xff]  ;;  %764 = vmatprep.mubr.msk.bf16.mxu0 %vm254_vm2, %v877_v6  ;;  %v878_v9 = vld [vmem:[#allocation5 + $0x8] sm:$0xff]   ;;  %236 = vperm.xlu1 %876, %v222_v8   ;;  %v223_v11 = vld [vmem:[#allocation7 + $0x18] sm:$0xff]  ;;  %v1051_v18 = vmov 0.0   ;;  %vm1052_vm3 = vmmov 0  }
  0x6d   : > { %v266_v5 = vand.u32 %v264_v3, %v215_v4  ;;  %226 = vperm.xlu0 %875, %v220_v7   ;;  %v221_v10 = vld [vmem:[#allocation7 + $0x8] sm:$0xff]  ;;  %v327_v12 = vld [vmem:[#allocation7 + $0x20] sm:$0xff]  ;;  %768 = vmatprep.subr.bf16.mxu1 %v1051_v18  ;;  %v879_v37 = vld [vmem:[#allocation5 + $0x10] sm:$0xff]   ;;  %vm344_vm4 = vcmask 261120   ;;  %vm401_vm5 = vcmask 130048   ;;  %vm460_vm6 = vcmask 1043456  }
  0x6e   : > { %v328_v13 = vld [vmem:[#allocation7 + $0x28] sm:$0xff]  ;;  %v395_v14 = vld [vmem:[#allocation7 + $0x40] sm:$0xff]  ;;  %772 = vmatprep.mubr.msk.bf16.mxu1 %vm1052_vm3, %v1051_v18  ;;  %v448_v59 = vld [vmem:[#allocation5 + $0x30] sm:$0xf]  ;;  %vm456_vm7 = vcmask 64512   ;;  %s745_s18 = sshll.u32 %s1095_s16, 4 }
  0x6f   : > { %762 = vmatprep.subr.bf16.mxu0 %v266_v5  ;;  %v450_v15 = vld [vmem:[#allocation7 + $0x60] sm:$0xff]  ;;  %s213_s20 = scalar_lea.vmem [#allocation8], %s1243_s21  ;;  %s1282_s22 = scalar_lea.hbm %s1329_s3, %s745_s18 }
  0x70   : > { %763 = vmatpush3.bf16.msra.mxu0 %v266_v5  ;;  %241 = vperm.xlu1 %876, %v223_v11   ;;  %v509_v16 = vld [vmem:[#allocation7 + $0x80] sm:$0xff]  ;;  %s638_s24 = sshll.u32 %s213_s20, 4  ;;  %s626_s4 = scalar_lea.sflag [#allocation4], %s1243_s21  ;;  %s1284_s24 = int_to_ptr.vmem [resolvable:$true] %s638_s24 }
  0x71   : > { %231 = vperm.xlu0 %875, %v221_v10   ;;  %v566_v17 = vld [vmem:[#allocation7 + $0xa0] sm:$0xff]  ;;  %776 = vmatprep.subr.bf16.mxu0 %v1051_v18  ;;  %s970_s5 = scalar_lea.vmem %s1284_s24, 16  ;;  %p1343_p0 = scmp.ne.s32.totalorder %s1338_s10, 0 }
  0x72   : > { %v393_v49 = vld [vmem:[#allocation5 + $0x20] sm:$0xf]  ;;  %p971_p8 = scmp.ne.s32.totalorder %s1284_s24, %s970_s5  ;;  %s1053_s16 = smov [#allocation8]  }
  0x73   : > { %765 = vmatmul.mubr.msk.bf16.vlgmr.msra.gmra.mrb[0].mxu0 %vm254_vm2, %v878_v9  ;;  %v507_v5 = vld [vmem:[#allocation5 + $0x40] sm:$0xf]  ;;  %s974_s7 = sshll.u32 %s1053_s16, 4  ;;  %s975_s7 = int_to_ptr.vmem [resolvable:$false] %s974_s7 }
  0x74   : > { %336 = vperm.xlu1 %876, %v328_v13   ;;  %778 = vmatprep.mubr.msk.bf16.mxu0 %vm1052_vm3, %v1051_v18  ;;  %p972_p1 = pnand %p971_p8, %p1343_p0  ;;  %s976_s8 = scalar_lea.vmem %s975_s7, 32 }
  0x75   : > { %331 = vperm.xlu0 %875, %v327_v12   ;;  %p977_p5 = scmp.lt.s32.totalorder %s1284_s24, %s975_s7  ;;  %p978_p9 = scmp.lt.s32.totalorder %s976_s8, %s970_s5 }
  0x76   : > { %p973_p3 = pneg %p972_p1 }
  0x77   : > { %p979_p12 = por %p978_p9, %p977_p5 }
  0x78   : > { %453 = vperm.xlu1 %876, %v450_v15   ;;  %v564_v15 = vld [vmem:[#allocation5 + $0x50] sm:$0xf] }
  0x79   : > { %398 = vperm.xlu0 %875, %v395_v14   ;;  %p980_p2 = pnand %p979_p12, %p973_p3 }
  0x7c   : > { %569 = vperm.xlu1 %876, %v566_v17  }
  0x7d   : > { %512 = vperm.xlu0 %875, %v509_v16  }
  0xeb   : > { %v237_v19 = vpop.permute.xlu1 %236 }
  0xec   : > { %v227_v20 = vpop.permute.xlu0 %226 }
  0xef   : > { %v242_v24 = vpop.permute.xlu1 %241 }
  0xf0   : > { %v232_v27 = vpop.permute.xlu0 %231 }
  0xf3   : > { %v337_v42 = vpop.permute.xlu1 %336 }
  0xf4   : > { %v332_v38 = vpop.permute.xlu0 %331 }
  0xf7   : > { %v454_v60 = vpop.permute.xlu1 %453 }
  0xf8   : > { %v399_v50 = vpop.permute.xlu0 %398 }
  0xfb   : > { %v570_v16 = vpop.permute.xlu1 %569 }
  0xfc   : > { %v513_v6 = vpop.permute.xlu0 %512 }
 0x146   : > { %v766_v21 = vpop.f32.mrb[0].mxu0 }
 0x147   : > { %v311_v22 = vadd.f32 %v766_v21, %v237_v19  ;;  %v302_v23 = vpop.f32.mrb[1].mxu0 }
 0x148   : > { %v303_v25 = vadd.f32 %v302_v23, %v227_v20  ;;  %v767_v26 = vpop.f32.mrb[2].mxu0 }
 0x149   : > { %v314_v28 = vadd.f32 %v767_v26, %v242_v24  ;;  %v305_v29 = vpop.f32.mrb[3].mxu0  ;;  %v319_v31 = vmax.f32 %v311_v22, 0.0 }
 0x14a   : > { %v306_v30 = vadd.f32 %v305_v29, %v232_v27  ;;  %v317_v33 = vmax.f32 %v303_v25, 0.0 }
 0x14b   : > { %v320_v32 = vmax.f32 %v314_v28, 0.0 }
 0x14c   : > { %v318_v34 = vmax.f32 %v306_v30, 0.0 }
 0x14d   : > { %v322_v35 = vpack.c.bf16 %v320_v32, %v319_v31 }
 0x14e   : > { %v321_v36 = vpack.c.bf16 %v318_v34, %v317_v33 }
 0x150   : > { %769 = vmatpush3.bf16.msra.mxu1 %v321_v36 }
 0x151   : > { %770 = vmatprep.subr.bf16.mxu1 %v1051_v18 }
 0x154   : > { %771 = vmatpush3.bf16.msra.mxu1 %v322_v35 }
 0x155   : > { %782 = vmatprep.subr.bf16.mxu1 %v1051_v18 }
 0x157   : > { %773 = vmatmul.mubr.msk.bf16.vlgmr.msra.gmra.mrb[0].mxu1 %vm344_vm4, %v879_v37 }
 0x158   : > { %784 = vmatprep.mubr.msk.bf16.mxu1 %vm1052_vm3, %v1051_v18 }
 0x22a   : > { %v382_v39 = vpop.f32.mrb[0].mxu1 }
 0x22b   : > { %v383_v40 = vadd.f32 %v382_v39, %v332_v38  ;;  %v774_v41 = vpop.f32.mrb[1].mxu1 }
 0x22c   : > { %v385_v43 = vpop.f32.mrb[2].mxu1 }
 0x22d   : > { %v386_v44 = vadd.f32 %v385_v43, %v337_v42  ;;  %v775_v45 = vpop.f32.mrb[3].mxu1  ;;  %v389_v46 = vmax.f32 %v383_v40, 0.0 }
 0x22f   : > { %v390_v47 = vmax.f32 %v386_v44, 0.0 }
 0x231   : > { %v391_v48 = vpack.c.bf16 %v390_v47, %v389_v46 }
 0x233   : > { %777 = vmatpush3.bf16.msra.mxu0 %v391_v48 }
 0x234   : > { %788 = vmatprep.subr.bf16.mxu0 %v1051_v18 }
 0x236   : > { %779 = vmatmul.mubr.msk.bf16.vlgmr.msra.gmra.mrb[4].mxu0 %vm401_vm5, %v393_v49 }
 0x237   : > { %790 = vmatprep.mubr.msk.bf16.mxu0 %vm1052_vm3, %v1051_v18 }
 0x309   : > { %v439_v51 = vpop.f32.mrb[4].mxu0 }
 0x30a   : > { %v440_v52 = vadd.f32 %v439_v51, %v399_v50  ;;  %v780_v53 = vpop.f32.mrb[5].mxu0 }
 0x30b   : > { %v442_v54 = vpop.f32.mrb[6].mxu0 }
 0x30c   : > { %v445_v55 = vmax.f32 %v440_v52, 0.0  ;;  %v781_v56 = vpop.f32.mrb[7].mxu0 }
 0x30e   : > { %v446_v57 = vpack.c.bf16 %v445_v55, %v445_v55 }
 0x310   : > { %v462_v58 = vsel %vm460_vm6, %v446_v57, 0 }
 0x311   : > { %783 = vmatpush3.bf16.msra.mxu1 %v462_v58 }
 0x312   : > { %794 = vmatprep.subr.bf16.mxu1 %v1051_v18 }
 0x314   : > { %785 = vmatmul.mubr.msk.bf16.vlgmr.msra.gmra.mrb[4].mxu1 %vm456_vm7, %v448_v59 }
 0x315   : > { %796 = vmatprep.mubr.msk.bf16.mxu1 %vm1052_vm3, %v1051_v18 }
 0x3e7   : > { %v498_v61 = vpop.f32.mrb[4].mxu1 }
 0x3e8   : > { %v499_v62 = vadd.f32 %v498_v61, %v454_v60  ;;  %v786_v63 = vpop.f32.mrb[5].mxu1 }
 0x3e9   : > { %v501_v0 = vpop.f32.mrb[6].mxu1 }
 0x3ea   : > { %v504_v1 = vmax.f32 %v499_v62, 0.0  ;;  %v787_v2 = vpop.f32.mrb[7].mxu1 }
 0x3ec   : > { %v505_v3 = vpack.c.bf16 %v504_v1, %v504_v1 }
 0x3ee   : > { %v519_v4 = vsel %vm460_vm6, %v505_v3, 0 }
 0x3ef   : > { %789 = vmatpush3.bf16.msra.mxu0 %v519_v4 }
 0x3f2   : > { %791 = vmatmul.mubr.msk.bf16.vlgmr.msra.gmra.mrb[8].mxu0 %vm456_vm7, %v507_v5 }
 0x4c5   : > { %v555_v7 = vpop.f32.mrb[8].mxu0 }
 0x4c6   : > { %v556_v8 = vadd.f32 %v555_v7, %v513_v6  ;;  %v792_v9 = vpop.f32.mrb[9].mxu0 }
 0x4c7   : > { %v558_v10 = vpop.f32.mrb[10].mxu0 }
 0x4c8   : > { %v561_v11 = vmax.f32 %v556_v8, 0.0  ;;  %v793_v12 = vpop.f32.mrb[11].mxu0 }
 0x4ca   : > { %v562_v13 = vpack.c.bf16 %v561_v11, %v561_v11 }
 0x4cc   : > { %v576_v14 = vsel %vm460_vm6, %v562_v13, 0 }
 0x4cd   : > { %795 = vmatpush3.bf16.msra.mxu1 %v576_v14 }
 0x4d0   : > { %797 = vmatmul.mubr.msk.bf16.vlgmr.msra.gmra.mrb[8].mxu1 %vm456_vm7, %v564_v15 }
 0x5a3   : > { %v612_v17 = vpop.f32.mrb[8].mxu1 }
 0x5a4   : > { %v613_v18 = vadd.f32 %v612_v17, %v570_v16  ;;  %v798_v19 = vpop.f32.mrb[9].mxu1 }
 0x5a5   : > { %v615_v20 = vpop.f32.mrb[10].mxu1 }
 0x5a6   : > { %v744_v21 = vmul.f32 -1.442695, %v613_v18  ;;  %v799_v22 = vpop.f32.mrb[11].mxu1 }
 0x5a8   : > { %880 = vpow2.f32 %v744_v21 }
 0x5b2   : > { %v881_v23 = vpop.eup %880 }
 0x5b3   : > { %v621_v24 = vadd.f32 1.0, %v881_v23 }
 0x5b5   : > { %882 = vrcp.f32 %v621_v24 }
 0x5bf   : > { %v883_v25 = vpop.eup %882 }
 0x5c0   : > { %624 = vst [vmem:[%s213_s20] sm:$0x1] %v883_v25 }
 0x5c1   : > { %983 = shalt.err (!%p980_p2)
}
 0x5c2   : > { %s984_s23 = scalar_lea.hbm %s1282_s22, 16  ;;  %s988_s17 = scalar_lea.hbm %s1329_s3, 32 }
 0x5c3   : > { %p985_p13 = scmp.ne.s32.totalorder %s1282_s22, %s984_s23  ;;  %p989_p4 = scmp.lt.u32.totalorder %s1282_s22, %s1329_s3 }
 0x5c4   : > { %p990_p7 = scmp.lt.u32.totalorder %s988_s17, %s984_s23  ;;  %p992_p8 = scmp.lt.u32.totalorder %s984_s23, %s1282_s22 }
 0x5c5   : > { %p986_p6 = pnand %p985_p13, %p1343_p0 }
 0x5c6   : > { %p991_p11 = por %p990_p7, %p989_p4 }
 0x5c7   : > { %p987_p10 = pneg %p986_p6 }
 0x5c8   : > { %p993_p1 = por %p992_p8, %p991_p11 }
 0x5ca   : > { %p994_p3 = pnand %p993_p1, %p987_p10 }
 0x5cc   : > { %997 = shalt.err (!%p994_p3)
}
 0x5cd   : > { %810 = dma.vmem_to_hbm [thread:$0]  (%p1343_p0), %s1284_s24, 16, %s1282_s22, %s626_s4  }
 0x5ce PF: > { %s650_s29 = sand.u32 1, %s1028_s12   ;;  %p1344_p5 = scmp.ne.s32.totalorder %s1334_s19, 0 }
 0x5cf   : > { %p1345_p9 = scmp.ge.s32.totalorder %s1040_s15, 2  ;;  %s651_s30 = scalar_lea.sflag [#allocation4], %s650_s29 }
 0x5d1   : > { %p824_p12 = pnand %p1345_p9, %p1344_p5 }
 0x5d3   : > { %1023 = dma.done.wait (!%p824_p12), %s651_s30, 16  }
 0x5d4   : > { %1025 = vsyncadd (!%p824_p12), %s651_s30, 4294967280  ;;  %p17_p2 = scmp.ge.s32.totalorder %s1184_s6, 4   ;;  %s1346_s12 = smov %s1032_s13 }
 0x5d5   : > { %s1347_s13 = smov %s1036_s14  ;;  %s1348_s14 = smov %s1193_s9 }
 0x5d6   : > { %s1349_s15 = smov %s1184_s6  ;;  %19 = sbr.rel (!%p17_p2) target bundleno = 6 (0x6), region = 95 }
 0x5dd   :  { %655 = vsyncpa [#allocation3], 1 }
 0x5de   :  { %657 = vsyncpa [#allocation3 + $0x1], 1 }
 0x5df   :  { %658 = vsyncpa [#allocation6], 1 }
 0x5e0   :  { %659 = vsyncpa [#allocation4], 1 }
 0x5e1   :  { %661 = vsyncpa [#allocation4 + $0x1], 1 }

</bundles_post_ra>
